<compile_context>
chip_gen: v6e
topology: v6e:2x2x1
jax: 0.10.0
libtpu: 0.0.40
codegen_flags: <defaults>
</compile_context>

<pallas_src>
import math

import jax
import jax.numpy as jnp
from jax.experimental import pallas as pl
from jax.experimental.pallas import tpu as pltpu

_PI = math.pi
_MIN_PALLAS_ELEMS_DEFAULT = 1 << 16  # below this, pure-JAX fallback (fusable)


def _make_cutoff_kernel(cutoff_lower: float, cutoff_upper: float):
    """Elementwise kernel body for a fixed (lower, upper) pair.

    The branch on cutoff_lower is a Python-level (compile-time) branch, exactly
    mirroring the PyTorch module where self.cutoff_lower is a constant.
    Compute is done in f32 regardless of the I/O dtype (free slack while
    HBM-bound; avoids bf16 boundary-precision issues).
    """
    if cutoff_lower > 0:
        # pi*(2*(d-L)/(U-L) + 1) == d*A + B  with constants folded in Python.
        a = 2.0 * _PI / (cutoff_upper - cutoff_lower)
        b = _PI - a * cutoff_lower

        def kernel(d_ref, o_ref):
            d = d_ref[...].astype(jnp.float32)
            cut = 0.5 * (jnp.cos(d * a + b) + 1.0)
            mask = (d < cutoff_upper) & (d > cutoff_lower)
            o_ref[...] = jnp.where(mask, cut, 0.0).astype(o_ref.dtype)
    else:
        inv_upper = _PI / cutoff_upper

        def kernel(d_ref, o_ref):
            d = d_ref[...].astype(jnp.float32)
            cut = 0.5 * (jnp.cos(d * inv_upper) + 1.0)
            o_ref[...] = jnp.where(d < cutoff_upper, cut, 0.0).astype(o_ref.dtype)

    return kernel


def _jax_cutoff(distances, cutoff_lower: float, cutoff_upper: float):
    """Pure-JAX path (small inputs / ragged tails) — same math as the kernel."""
    x = distances.astype(jnp.float32)
    if cutoff_lower > 0:
        a = 2.0 * _PI / (cutoff_upper - cutoff_lower)
        b = _PI - a * cutoff_lower
        cut = 0.5 * (jnp.cos(x * a + b) + 1.0)
        cut = jnp.where((x < cutoff_upper) & (x > cutoff_lower), cut, 0.0)
    else:
        cut = 0.5 * (jnp.cos(x * (_PI / cutoff_upper)) + 1.0)
        cut = jnp.where(x < cutoff_upper, cut, 0.0)
    return cut.astype(distances.dtype)


def _choose_lanes(n: int):
    """Widest lane-dense last dim (multiple of 128) that evenly divides n."""
    for lanes in (4096, 2048, 1024, 512, 256, 128):
        if n % lanes == 0:
            return lanes
    return None


def _pick_block_rows(rows: int, lanes: int, itemsize: int) -> int:
    """Tile height: ~2 MiB/buffer, dtype-aware sublane alignment, >= ~4 blocks."""
    sub = 8 * max(1, 4 // itemsize)          # 8 (f32) / 16 (bf16) / 32 (int8)
    target_tile_bytes = 2 << 20              # 2 MiB per buffer; x2 ops x2 bufs = 8 MiB VMEM
    target_rows = max(sub, (target_tile_bytes // (lanes * itemsize)) // sub * sub)
    # Keep at least ~4 grid blocks on mid-size inputs so v7x's 2 TCs each get
    # >= 2 blocks (core parallelism + double-buffer overlap).
    quarter = max(sub, pl.cdiv(pl.cdiv(rows, 4), sub) * sub)
    block_rows = min(target_rows, quarter)
    if block_rows >= rows:
        # Single full-extent block: exact shape, no edge padding/masking.
        return rows
    return block_rows


def _call_tiled(kernel, slab, block_rows, lanes, dtype):
    rows = slab.shape[0]
    grid = (pl.cdiv(rows, block_rows),)
    return pl.pallas_call(
        kernel,
        out_shape=jax.ShapeDtypeStruct(slab.shape, dtype),
        grid_spec=pltpu.PrefetchScalarGridSpec(
            num_scalar_prefetch=0,
            grid=grid,
            in_specs=[pl.BlockSpec((block_rows, lanes), lambda i: (i, 0))],
            out_specs=pl.BlockSpec((block_rows, lanes), lambda i: (i, 0)),
        ),
        compiler_params=pltpu.CompilerParams(
            dimension_semantics=("parallel",)),
    )(slab)


def cosine_cutoff(distances: jax.Array,
                  cutoff_lower: float = 0.0,
                  cutoff_upper: float = 5.0,
                  min_pallas_elems: int = _MIN_PALLAS_ELEMS_DEFAULT) -> jax.Array:
    """Pallas implementation of CosineCutoff.forward.

    `distances` may be any shape.  Small inputs return the pure-JAX expression
    (fusable by XLA); large inputs stream through the Pallas kernel with a
    zero-copy lane-dense reshape, and a <128-element ragged tail (if any) is
    handled in plain JAX.
    """
    cutoff_lower = float(cutoff_lower)
    cutoff_upper = float(cutoff_upper)

    orig_shape = distances.shape
    dtype = distances.dtype

    flat = distances.reshape(-1)
    n = flat.shape[0]
    if n == 0:
        return distances

    # Small-input escape hatch: launch + grid-step overhead dominates; let XLA
    # fuse the elementwise math instead.
    if n < max(min_pallas_elems, 1):
        return _jax_cutoff(distances, cutoff_lower, cutoff_upper)

    kernel = _make_cutoff_kernel(cutoff_lower, cutoff_upper)
    itemsize = jnp.dtype(dtype).itemsize

    lanes = _choose_lanes(n)
    if lanes is not None:
        # Fast path: no pad, no slice — reshape of a flat row-major buffer is a
        # bitcast. Last grid block may be partial; Pallas masks the writeback,
        # which is safe for a purely elementwise kernel.
        rows = n // lanes
        block_rows = _pick_block_rows(rows, lanes, itemsize)
        out = _call_tiled(kernel, flat.reshape(rows, lanes), block_rows, lanes, dtype)
        return out.reshape(orig_shape)

    # Ragged path (n % 128 != 0): run the 128-aligned prefix through the
    # zero-copy kernel and compute only the (<128-element) tail in plain JAX.
    tail_len = n % 128
    prefix_len = n - tail_len
    prefix = flat[:prefix_len]
    tail = flat[prefix_len:]

    lanes = _choose_lanes(prefix_len)
    rows = prefix_len // lanes
    block_rows = _pick_block_rows(rows, lanes, itemsize)
    out_prefix = _call_tiled(kernel, prefix.reshape(rows, lanes),
                             block_rows, lanes, dtype).reshape(-1)
    out_tail = _jax_cutoff(tail, cutoff_lower, cutoff_upper)
    return jnp.concatenate([out_prefix, out_tail]).reshape(orig_shape)


def _reference(distances, cutoff_lower, cutoff_upper):
    """Pure-JAX reference mirroring the PyTorch forward (f32 math)."""
    if cutoff_lower > 0:
        cut = 0.5 * (jnp.cos(math.pi * (2 * (distances - cutoff_lower)
                                        / (cutoff_upper - cutoff_lower) + 1.0)) + 1.0)
        cut = cut * (distances < cutoff_upper)
        cut = cut * (distances > cutoff_lower)
        return cut
    else:
        cut = 0.5 * (jnp.cos(distances * math.pi / cutoff_upper) + 1.0)
        cut = cut * (distances < cutoff_upper)
        return cut


if __name__ == "__main__":
    key = jax.random.PRNGKey(0)
    ok = True

    # case 1: default module (cutoff_lower=0.0, cutoff_upper=5.0),
    # small (num_atoms, num_neighbors) = (8, 32) -> pure-JAX fallback path.
    distances = jax.random.uniform(key, (8, 32), dtype=jnp.float32,
                                   minval=0.0, maxval=7.0)
    out = jax.block_until_ready(cosine_cutoff(distances, 0.0, 5.0))
    ref = _reference(distances, 0.0, 5.0)
    ok &= bool(jnp.allclose(out, ref, atol=1e-6, rtol=1e-6))

    # case 2: non-zero lower cutoff branch on the same small input.
    out2 = jax.block_until_ready(cosine_cutoff(distances, 1.0, 5.0))
    ref2 = _reference(distances, 1.0, 5.0)
    ok &= bool(jnp.allclose(out2, ref2, atol=1e-6, rtol=1e-6))

    # case 3: force the Pallas path on the small input (full-extent block).
    out3 = jax.block_until_ready(cosine_cutoff(distances, 0.0, 5.0,
                                               min_pallas_elems=0))
    ok &= bool(jnp.allclose(out3, ref, atol=1e-6, rtol=1e-6))

    # case 4: lane-dense f32 slab above the threshold -> tiled Pallas fast path.
    key3 = jax.random.PRNGKey(2)
    big = jax.random.uniform(key3, (64, 4096), dtype=jnp.float32,
                             minval=0.0, maxval=7.0)
    out4 = jax.block_until_ready(cosine_cutoff(big, 0.0, 5.0))
    ref4 = _reference(big, 0.0, 5.0)
    ok &= bool(jnp.allclose(out4, ref4, atol=1e-6, rtol=1e-6))
    out4b = jax.block_until_ready(cosine_cutoff(big, 1.0, 5.0))
    ref4b = _reference(big, 1.0, 5.0)
    ok &= bool(jnp.allclose(out4b, ref4b, atol=1e-6, rtol=1e-6))

    # case 5: bf16 input -> dtype-aware sublane tiling + in-kernel f32 compute.
    big_bf16 = big.astype(jnp.bfloat16)
    out5 = jax.block_until_ready(cosine_cutoff(big_bf16, 0.0, 5.0))
    ref5 = _reference(big_bf16.astype(jnp.float32), 0.0, 5.0).astype(jnp.bfloat16)
    ok &= bool(jnp.allclose(out5.astype(jnp.float32), ref5.astype(jnp.float32),
                            atol=2e-2, rtol=2e-2))

    # case 6: large ragged flat size (prefix through kernel, <128 tail in JAX).
    key4 = jax.random.PRNGKey(3)
    ragged = jax.random.uniform(key4, (64 * 4096 + 37,), dtype=jnp.float32,
                                minval=0.0, maxval=7.0)
    out6 = jax.block_until_ready(cosine_cutoff(ragged, 0.0, 5.0))
    ref6 = _reference(ragged, 0.0, 5.0)
    ok &= bool(jnp.allclose(out6, ref6, atol=1e-6, rtol=1e-6))

    if ok:
        print("KERNEL_OK")
    else:
        print("KERNEL_MISMATCH")
</pallas_src>

<mosaic_0001>
module attributes {stable_mosaic.version = 11 : i64} {
  func.func @kernel(%arg0: i32, %arg1: memref<1x256xf32, #tpu.memory_space<vmem>>, %arg2: memref<1x256xf32, #tpu.memory_space<vmem>>) attributes {dimension_semantics = [#tpu.dimension_semantics<parallel>], iteration_bounds = array<i64: 1>, scalar_prefetch = 0 : i64, scratch_operands = 0 : i64, tpu.core_type = #tpu.core_type<tc>, window_params = [{transform_indices = @transform_0, window_bounds = array<i64: 1, 256>}, {transform_indices = @transform_1, window_bounds = array<i64: 1, 256>}]} {
    %c0 = arith.constant 0 : index
    %c0_0 = arith.constant 0 : index
    %0 = vector.load %arg1[%c0, %c0_0] : memref<1x256xf32, #tpu.memory_space<vmem>>, vector<1x256xf32>
    %cst = arith.constant 0.628318548 : f32
    %1 = vector.broadcast %cst : f32 to vector<1x256xf32>
    %2 = arith.mulf %0, %1 : vector<1x256xf32>
    %3 = math.cos %2 : vector<1x256xf32>
    %cst_1 = arith.constant 1.000000e+00 : f32
    %4 = vector.broadcast %cst_1 : f32 to vector<1x256xf32>
    %5 = arith.addf %3, %4 : vector<1x256xf32>
    %cst_2 = arith.constant 5.000000e-01 : f32
    %6 = vector.broadcast %cst_2 : f32 to vector<1x256xf32>
    %7 = arith.mulf %6, %5 : vector<1x256xf32>
    %cst_3 = arith.constant 5.000000e+00 : f32
    %8 = vector.broadcast %cst_3 : f32 to vector<1x256xf32>
    %9 = arith.cmpf olt, %0, %8 : vector<1x256xf32>
    %cst_4 = arith.constant 0.000000e+00 : f32
    %10 = vector.broadcast %cst_4 : f32 to vector<1x256xf32>
    %11 = arith.select %9, %7, %10 : vector<1x256xi1>, vector<1x256xf32>
    %c0_5 = arith.constant 0 : index
    %c0_6 = arith.constant 0 : index
    %12 = vector.load %arg2[%c0_5, %c0_6] : memref<1x256xf32, #tpu.memory_space<vmem>>, vector<1x256xf32>
    tpu.vector_store %arg2[%c0_5, %c0_6], %11 {strides = array<i32>} : memref<1x256xf32, #tpu.memory_space<vmem>>, vector<1x256xf32>,
    return
  }
  func.func @transform_0(%arg0: i32) -> (i32, i32) {
    %c0_i32 = arith.constant 0 : i32
    %c0_i32_0 = arith.constant 0 : i32
    return %arg0, %c0_i32 : i32, i32
  }
  func.func @transform_1(%arg0: i32) -> (i32, i32) {
    %c0_i32 = arith.constant 0 : i32
    %c0_i32_0 = arith.constant 0 : i32
    return %arg0, %c0_i32 : i32, i32
  }
}

</mosaic_0001>

<bundles_post_ra>
// kernel: tpu_custom_call.1
= control target key start
LH: loop header
LB: loop body
LE: loop exit
PB: predicated region body
PF: predicated region fallthrough
CT: control target
= control target key end

     0   :  { %6 = vsyncpa [#allocation3], 0  ;;  %s263_s0 = inlined_call_operand.hbm [shape: f32[1,256], index: 0, kind: input, shape index: {}]   ;;  %s264_s1 = inlined_call_operand.hbm [shape: f32[1,256], index: 1, kind: output, shape index: {}]  }
   0x1   :  { %7 = vsyncpa [#allocation4], 0  ;;  %s214_s6 = smov [#allocation2]  }
   0x2   :  { %s14_s7 = sshll.u32 %s214_s6, 4  ;;  %s15_s7 = int_to_ptr.vmem [resolvable:$true] %s14_s7 }
   0x3   :  { %s178_s8 = scalar_lea.vmem %s15_s7, 32  ;;  %p183_p1 = scmp.lt.s32.totalorder %s15_s7, %s15_s7 }
   0x4   :  { %p179_p0 = scmp.ne.s32.totalorder %s15_s7, %s178_s8  ;;  %p184_p2 = scmp.lt.s32.totalorder %s178_s8, %s178_s8 }
   0x6   :  { %p185_p3 = por %p184_p2, %p183_p1 }
   0x8   :  { %p186_p4 = pnand %p185_p3, %p179_p0 }
   0xa   :  { %189 = shalt.err (!%p186_p4)
}
   0xb   :  { %17 = dma.hbm_to_vmem [thread:$0]  %s263_s0, 32, %s15_s7, [#allocation3]  }
   0xc   :  { %210 = dma.done.wait [#allocation3], 32  }
   0xd   :  { %211 = vsyncadd [#allocation3], 4294967264  ;;  %v235_v0 = vld [vmem:[#allocation2] sm:$0x3]  ;;  %v215_v13 = vmov 683565275  }
   0xe   :  { %v238_v1 = vmul.f32 0.62831855, %v235_v0  ;;  %v216_v15 = vmov 2475754826   ;;  %v217_v17 = vmov 2131351028  }
   0xf   :  { %v218_v19 = vmov 2102212464   ;;  %v219_v21 = vmov 920167782   ;;  %v220_v28 = vmov 1326507024  }
  0x10   :  { %v26_v2 = vand.u32 2139095040, %v238_v1  ;;  %v23_v4 = vand.u32 2147483647, %v238_v1  ;;  %vm25_vm7 = vcmp.lt.s32.totalorder %v238_v1, 0  ;;  %vm115_vm12 = vweird.f32 %v238_v1  ;;  %s221_s0 = smov [#allocation5]  }
  0x11   :  { %s141_s11 = sshll.u32 %s221_s0, 4  ;;  %vm128_vm13 = vcmp.lt.f32.partialorder %v235_v0, 5.0  ;;  %s142_s11 = int_to_ptr.vmem [resolvable:$true] %s141_s11 }
  0x12   :  { %v27_v3 = vshrl.u32 %v26_v2, 23  ;;  %v30_v7 = vand.u32 8388607, %v23_v4  ;;  %vm24_vm8 = vcmp.le.f32.partialorder %v23_v4, 0.7853982  ;;  %s190_s12 = scalar_lea.vmem %s142_s11, 32  ;;  %p195_p6 = scmp.lt.s32.totalorder %s142_s11, %s142_s11 }
  0x13   :  { %p191_p5 = scmp.ne.s32.totalorder %s142_s11, %s190_s12  ;;  %p196_p7 = scmp.lt.s32.totalorder %s190_s12, %s190_s12 }
  0x14   :  { %v150_v5 = vadd.s32 4294967169, %v27_v3  ;;  %v31_v10 = vor.u32 8388608, %v30_v7 }
  0x15   :  { %p197_p8 = por %p196_p7, %p195_p6 }
  0x16   :  { %v33_v6 = vadd.s32 1, %v150_v5  ;;  %v71_v30 = vshll.u32 %v31_v10, 8 }
  0x17   :  { %p198_p9 = pnand %p197_p8, %p191_p5 }
  0x18   :  { %vm34_vm0 = vcmp.gt.s32.totalorder %v33_v6, 0 }
  0x19   :  { %v35_v8 = vsel %vm34_vm0, %v33_v6, 0 }
  0x1a   :  { %v37_v9 = vand.u32 31, %v35_v8  ;;  %v36_v11 = vshrl.u32 %v35_v8, 5 }
  0x1c   :  { %v38_v12 = vsub.s32 32, %v37_v9  ;;  %v40_v14 = vshll.u32 %v215_v13, %v37_v9  ;;  %v43_v16 = vshll.u32 %v216_v15, %v37_v9  ;;  %v46_v18 = vshll.u32 %v217_v17, %v37_v9 }
  0x1d   :  { %v49_v20 = vshll.u32 %v218_v19, %v37_v9  ;;  %v52_v22 = vshll.u32 %v219_v21, %v37_v9  ;;  %vm55_vm1 = vcmp.lt.s32.totalorder %v36_v11, 1  ;;  %vm58_vm2 = vcmp.lt.s32.totalorder %v36_v11, 4 }
  0x1e   :  { %v39_v23 = vshrl.u32 %v215_v13, %v38_v12  ;;  %v41_v24 = vshrl.u32 %v216_v15, %v38_v12  ;;  %v44_v25 = vshrl.u32 %v217_v17, %v38_v12  ;;  %v47_v26 = vshrl.u32 %v218_v19, %v38_v12 }
  0x1f   :  { %v50_v27 = vshrl.u32 %v219_v21, %v38_v12  ;;  %v53_v29 = vshrl.u32 %v220_v28, %v38_v12  ;;  %vm56_vm3 = vcmp.lt.s32.totalorder %v36_v11, 2  ;;  %vm57_vm4 = vcmp.lt.s32.totalorder %v36_v11, 3 }
  0x20   :  { %v42_v31 = vor.u32 %v41_v24, %v40_v14  ;;  %v45_v32 = vor.u32 %v44_v25, %v43_v16  ;;  %v48_v33 = vor.u32 %v47_v26, %v46_v18 }
  0x21   :  { %v51_v34 = vor.u32 %v50_v27, %v49_v20  ;;  %v54_v35 = vor.u32 %v53_v29, %v52_v22  ;;  %v130_v29 = vlaneseq }
  0x22   :  { %v59_v36 = vsel %vm55_vm1, %v39_v23, %v42_v31  ;;  %v60_v37 = vsel %vm58_vm2, %v48_v33, 2102212464  ;;  %v63_v38 = vsel %vm55_vm1, %v42_v31, %v45_v32  ;;  %v67_v39 = vsel %vm55_vm1, %v45_v32, %v48_v33 }
  0x23   :  { %v61_v40 = vsel %vm57_vm4, %v45_v32, %v60_v37  ;;  %v64_v41 = vsel %vm58_vm2, %v51_v34, 920167782  ;;  %v68_v42 = vsel %vm58_vm2, %v54_v35, 1326507024  ;;  %vm132_vm14 = vcmp.lt.s32.totalorder %v130_v29, 256 }
  0x24   :  { %v65_v43 = vsel %vm57_vm4, %v48_v33, %v64_v41  ;;  %v69_v44 = vsel %vm57_vm4, %v51_v34, %v68_v42  ;;  %v62_v45 = vsel %vm56_vm3, %v59_v36, %v61_v40 }
  0x25   :  { %v66_v46 = vsel %vm56_vm3, %v63_v38, %v65_v43  ;;  %v70_v47 = vsel %vm56_vm3, %v67_v39, %v69_v44  ;;  %v78_v52 = vmul.u32 %v71_v30, %v62_v45 }
  0x26   :  { %v244_v48 = vmul.u32.u64.low %v71_v30, %v70_v47  ;;  %v245_v49 = vmul.u32.u64.high %v71_v30, %v70_v47, %v244_v48  ;;  %v247_v50 = vmul.u32.u64.low %v71_v30, %v66_v46  ;;  %v248_v51 = vmul.u32.u64.high %v71_v30, %v66_v46, %v247_v50 }
  0x28   :  { %vm80_vm5 = vc.u32 %v245_v49, %v247_v50  ;;  %v81_v53 = vadd.s32 1, %v248_v51  ;;  %v79_v2 = vadd.s32 %v247_v50, %v245_v49 }
  0x2a   :  { %v82_v54 = vsel %vm80_vm5, %v81_v53, %v248_v51 }
  0x2b   :  { %v83_v55 = vadd.s32 %v82_v54, %v78_v52 }
  0x2d   :  { %v84_v56 = vadd.s32 536870912, %v83_v55 }
  0x2f   :  { %v85_v57 = vshrl.u32 %v84_v56, 30 }
  0x31   :  { %v86_v58 = vshll.u32 %v85_v57, 30  ;;  %v109_v18 = vsub.s32 4, %v85_v57 }
  0x33   :  { %v87_v59 = vsub.s32 %v83_v55, %v86_v58  ;;  %v110_v20 = vsel %vm25_vm7, %v109_v18, %v85_v57 }
  0x34   :  { %v112_v21 = vsel %vm24_vm8, 0, %v110_v20 }
  0x35   :  { %v89_v60 = vsub.s32 0, %v87_v59  ;;  %v116_v22 = vand.u32 3, %v112_v21 }
  0x37   :  { %v151_v61 = vmin.u32 %v89_v60, %v87_v59  ;;  %vm121_vm9 = vcmp.eq.s32.totalorder %v116_v22, 2  ;;  %vm118_vm10 = vcmp.eq.s32.totalorder %v116_v22, 0  ;;  %vm117_vm11 = vcmp.lt.s32.totalorder %v116_v22, 2 }
  0x39   :  { %v91_v62 = vclz %v151_v61 }
  0x3b   :  { %v152_v63 = vadd.s32 4294967294, %v91_v62 }
  0x3d   :  { %vm153_vm6 = vcmp.lt.s32.totalorder %v152_v63, 0 }
  0x3e   :  { %v94_v3 = vsel %vm153_vm6, 0, %v152_v63 }
  0x3f   :  { %v95_v5 = vsub.s32 32, %v94_v3  ;;  %v96_v6 = vshll.u32 %v87_v59, %v94_v3  ;;  %v99_v7 = vsub.s32 4294967266, %v94_v3 }
  0x41   :  { %v97_v8 = vshrl.u32 %v79_v2, %v95_v5  ;;  %v100_v9 = vadd.s32 127, %v99_v7 }
  0x43   :  { %v98_v10 = vor.u32 %v97_v8, %v96_v6  ;;  %v101_v11 = vshll.u32 %v100_v9, 23 }
  0x45   :  { %v102_v12 = vor.u32 4788187, %v101_v11  ;;  %v105_v13 = vcvt.s32.f32 %v98_v10 }
  0x47   :  { %v103_v14 = vand.u32 2147483647, %v102_v12 }
  0x49   :  { %v106_v15 = vmul.f32 %v105_v13, %v103_v14 }
  0x4b   :  { %v107_v16 = vxor.u32 2147483648, %v106_v15 }
  0x4d   :  { %v108_v17 = vsel %vm25_vm7, %v107_v16, %v106_v15 }
  0x4e   :  { %v111_v19 = vsel %vm24_vm8, %v238_v1, %v108_v17 }
  0x4f   :  { %166 = vcosq.f32 %v111_v19 }
  0x50   :  { %168 = vsinq.f32 %v111_v19 }
  0x5c   :  { %v167_v23 = vpop.eup %166 }
  0x5d   :  { %v169_v24 = vpop.eup %168  ;;  %v122_v25 = vxor.u32 2147483648, %v167_v23 }
  0x5e   :  { %v119_v26 = vxor.u32 2147483648, %v169_v24 }
  0x5f   :  { %v123_v4 = vsel %vm121_vm9, %v122_v25, %v169_v24 }
  0x60   :  { %v120_v27 = vsel %vm118_vm10, %v167_v23, %v119_v26 }
  0x61   :  { %v124_v28 = vsel %vm117_vm11, %v120_v27, %v123_v4 }
  0x62   :  { %v125_v30 = vsel %vm115_vm12, nan, %v124_v28 }
  0x63   :  { %v126_v31 = vadd.f32 1.0, %v125_v30 }
  0x65   :  { %v127_v32 = vmul.f32 0.5, %v126_v31 }
  0x67   :  { %v129_v33 = vsel %vm128_vm13, %v127_v32, 0.0 }
  0x68   :  { %134 = vst.msk [vmem:[#allocation5] sm:$0x3] %vm132_vm14, %v129_v33 }
  0x69   :  { %201 = shalt.err (!%p198_p9)
}
  0x6a   :  { %144 = dma.vmem_to_hbm [thread:$0]  %s142_s11, 32, %s264_s1, [#allocation4]  }
  0x6b   :  { %212 = dma.done.wait [#allocation4], 32  }
  0x6c   :  { %213 = vsyncadd [#allocation4], 4294967264 }
  0x6d   :  { %148 = vsyncpa [#allocation3], 1 }
  0x6e   :  { %149 = vsyncpa [#allocation4], 1 }

</bundles_post_ra>
